<compile_context>
chip_gen: v7x
topology: tpu7x:2x2x1
jax: 0.10.0
libtpu: 0.0.40
codegen_flags: <defaults>
</compile_context>

<pallas_src>
import functools
import math

import jax
import jax.numpy as jnp
from jax.experimental import pallas as pl
from jax.experimental.pallas import tpu as pltpu


def _round_up(x, m):
    return ((x + m - 1) // m) * m


def _sublane_multiple(dtype):
    # Min sublane tile: 8 for 4-byte, 16 for 2-byte, 32 for 1-byte dtypes.
    itemsize = jnp.dtype(dtype).itemsize
    return max(8, 32 // max(1, itemsize))


def _encoder_kernel(x_ref, gain_ref, bias_ref, o_ref, *, nb_input_copies,
                    slab_path):
    # x_ref:    (TILE, D)          row tile of the flattened input
    # gain_ref: (1, nb_inputs)     broadcast parameters (nb_inputs = D*copies)
    # bias_ref: (1, nb_inputs)
    # o_ref:    (TILE, nb_inputs)  lane-dense output tile
    x = x_ref[...]
    d = x.shape[-1]
    if nb_input_copies == 1:
        o_ref[...] = (gain_ref[...] * (x + bias_ref[...])).astype(o_ref.dtype)
    elif slab_path:
        # D is a multiple of 128: each copy is a lane-aligned slab; write it
        # directly with static slices (no (TILE, copies*D) temp).
        for c in range(nb_input_copies):
            lo = c * d
            g = gain_ref[:, lo:lo + d]
            b = bias_ref[:, lo:lo + d]
            o_ref[:, lo:lo + d] = (g * (x + b)).astype(o_ref.dtype)
    else:
        # torch.tile((copies,)): repeat the whole last dim `copies` times.
        tiled = jnp.concatenate([x] * nb_input_copies, axis=-1)
        o_ref[...] = (gain_ref[...] * (tiled + bias_ref[...])).astype(o_ref.dtype)


def _pick_tile(R, row_tile, sublane):
    """Balanced row tile: >=2 roughly equal blocks whenever R is non-trivial."""
    if R <= max(sublane, 256):
        return R                      # tiny input: single block is fine
    num_blocks = max(2, pl.cdiv(R, row_tile))
    tile = _round_up(pl.cdiv(R, num_blocks), sublane)
    return min(tile, _round_up(R, sublane))


def encoder_forward(inputs, enc_gain, enc_bias, nb_input_copies, *,
                    row_tile=2048):
    """inputs: (..., D); enc_gain/enc_bias: (nb_inputs,) with
    nb_inputs == D * nb_input_copies.  Returns (..., nb_inputs)."""
    *lead, D = inputs.shape
    nb_inputs = D * nb_input_copies
    assert enc_gain.shape == (nb_inputs,)
    assert enc_bias.shape == (nb_inputs,)

    # Output dtype follows jnp/torch promotion (f32 params x bf16 input -> f32).
    out_dtype = jnp.result_type(inputs.dtype, enc_gain.dtype, enc_bias.dtype)

    R = math.prod(lead) if lead else 1
    x2d = inputs.reshape(R, D)                 # free metadata reshape
    gain2d = enc_gain.reshape(1, nb_inputs)
    bias2d = enc_bias.reshape(1, nb_inputs)

    sublane = max(_sublane_multiple(inputs.dtype), _sublane_multiple(out_dtype))
    tile = _pick_tile(R, row_tile, sublane)
    grid = (pl.cdiv(R, tile),)

    slab_path = (nb_input_copies > 1) and (D % 128 == 0)

    kernel = functools.partial(_encoder_kernel,
                               nb_input_copies=nb_input_copies,
                               slab_path=slab_path)

    # --- VMEM budget (per buffer, x2 for double-buffering) -----------------
    in_itemsize = jnp.dtype(inputs.dtype).itemsize
    out_itemsize = jnp.dtype(out_dtype).itemsize
    param_itemsize = jnp.dtype(enc_gain.dtype).itemsize
    padded_d = _round_up(D, 128)               # input block is lane-padded
    padded_n = _round_up(nb_inputs, 128)
    vmem_need = 2 * tile * (padded_d * in_itemsize + padded_n * out_itemsize)
    vmem_need += 2 * 2 * 8 * padded_n * param_itemsize
    vmem_limit = None
    if vmem_need > (12 << 20):                 # only raise above v5e default
        vmem_limit = min(_round_up(int(vmem_need * 5 // 4), 1 << 20), 60 << 20)

    # Accurate cost hint: purely HBM-bound streaming op.
    cost = pl.CostEstimate(
        flops=2 * R * nb_inputs,
        transcendentals=0,
        bytes_accessed=(R * D * in_itemsize + R * nb_inputs * out_itemsize
                        + 2 * nb_inputs * param_itemsize),
    )

    out2d = pl.pallas_call(
        kernel,
        out_shape=jax.ShapeDtypeStruct((R, nb_inputs), out_dtype),
        grid_spec=pltpu.PrefetchScalarGridSpec(
            num_scalar_prefetch=0,
            grid=grid,
            in_specs=[
                pl.BlockSpec((tile, D), lambda i: (i, 0)),
                pl.BlockSpec((1, nb_inputs), lambda i: (0, 0)),
                pl.BlockSpec((1, nb_inputs), lambda i: (0, 0)),
            ],
            out_specs=pl.BlockSpec((tile, nb_inputs), lambda i: (i, 0)),
        ),
        compiler_params=pltpu.CompilerParams(
            dimension_semantics=("parallel",),
            vmem_limit_bytes=vmem_limit,
        ),
        cost_estimate=cost,
    )(x2d, gain2d, bias2d)

    return out2d.reshape(*lead, nb_inputs)     # free metadata reshape


def _reference(inputs, enc_gain, enc_bias, nb_input_copies):
    reps = (1,) * (inputs.ndim - 1) + (nb_input_copies,)
    return enc_gain * (jnp.tile(inputs, reps) + enc_bias)


if __name__ == "__main__":
    # Module-consistent small shapes: (batch, time, features), with the
    # feature dim replicated nb_input_copies times by the encoder.
    B, T, D = 2, 8, 32
    nb_input_copies = 4
    nb_inputs = D * nb_input_copies          # 128 -> lane-dense output
    encoder_weight_scale = 1.5
    bias_val = 0.2

    key = jax.random.PRNGKey(0)
    inputs = jax.random.normal(key, (B, T, D), dtype=jnp.float32)

    # Deterministic parameter init, mirroring torch.nn.init.constant_.
    enc_gain = jnp.full((nb_inputs,), encoder_weight_scale, dtype=jnp.float32)
    enc_bias = jnp.full((nb_inputs,), bias_val, dtype=jnp.float32)

    out = encoder_forward(inputs, enc_gain, enc_bias, nb_input_copies)
    out = jax.block_until_ready(out)
    ref = _reference(inputs, enc_gain, enc_bias, nb_input_copies)
    assert out.shape == (B, T, nb_inputs)
    assert jnp.allclose(out, ref, atol=1e-6, rtol=1e-6)

    # Multi-block path: R = 2*520 = 1040 rows -> two balanced 520-row blocks
    # (previously 1024 + 16), both TensorCores busy on v7x.
    B2, T2 = 2, 520
    inputs2 = jax.random.normal(jax.random.PRNGKey(1), (B2, T2, D),
                                dtype=jnp.float32)
    out2 = jax.block_until_ready(
        encoder_forward(inputs2, enc_gain, enc_bias, nb_input_copies))
    ref2 = _reference(inputs2, enc_gain, enc_bias, nb_input_copies)
    assert out2.shape == (B2, T2, nb_inputs)
    assert jnp.allclose(out2, ref2, atol=1e-6, rtol=1e-6)

    # Slab fast path (D % 128 == 0) + bf16 inputs with f32 params
    # (output promotes to f32, matching the torch module's buffers).
    D3, copies3 = 128, 2
    nb_inputs3 = D3 * copies3
    gain3 = jnp.full((nb_inputs3,), encoder_weight_scale, dtype=jnp.float32)
    bias3 = jnp.full((nb_inputs3,), bias_val, dtype=jnp.float32)
    inputs3 = jax.random.normal(jax.random.PRNGKey(2), (4, 96, D3),
                                dtype=jnp.bfloat16)
    out3 = jax.block_until_ready(
        encoder_forward(inputs3, gain3, bias3, copies3))
    ref3 = _reference(inputs3, gain3, bias3, copies3)
    assert out3.shape == (4, 96, nb_inputs3)
    assert out3.dtype == jnp.float32
    assert jnp.allclose(out3, ref3, atol=1e-5, rtol=1e-5)

    print("KERNEL_OK")
</pallas_src>

<mosaic_0001>
module attributes {stable_mosaic.version = 11 : i64} {
  func.func @_encoder_kernel(%arg0: i32, %arg1: memref<16x32xf32, #tpu.memory_space<vmem>>, %arg2: memref<1x128xf32, #tpu.memory_space<vmem>>, %arg3: memref<1x128xf32, #tpu.memory_space<vmem>>, %arg4: memref<16x128xf32, #tpu.memory_space<vmem>>) attributes {dimension_semantics = [#tpu.dimension_semantics<parallel>], iteration_bounds = array<i64: 1>, scalar_prefetch = 0 : i64, scratch_operands = 0 : i64, tpu.core_type = #tpu.core_type<tc>, window_params = [{transform_indices = @transform_0, window_bounds = array<i64: 16, 32>}, {pipeline_mode = #tpu.pipeline_mode<synchronous>, transform_indices = @transform_1, window_bounds = array<i64: 1, 128>}, {pipeline_mode = #tpu.pipeline_mode<synchronous>, transform_indices = @transform_2, window_bounds = array<i64: 1, 128>}, {transform_indices = @transform_3, window_bounds = array<i64: 16, 128>}]} {
    %c0 = arith.constant 0 : index
    %c0_0 = arith.constant 0 : index
    %0 = vector.load %arg1[%c0, %c0_0] : memref<16x32xf32, #tpu.memory_space<vmem>>, vector<16x32xf32>
    %1 = tpu.concatenate %0, %0, %0, %0 in 1 : vector<16x32xf32>, vector<16x32xf32>, vector<16x32xf32>, vector<16x32xf32> -> vector<16x128xf32>
    %c0_1 = arith.constant 0 : index
    %c0_2 = arith.constant 0 : index
    %2 = vector.load %arg2[%c0_1, %c0_2] : memref<1x128xf32, #tpu.memory_space<vmem>>, vector<1x128xf32>
    %c0_3 = arith.constant 0 : index
    %c0_4 = arith.constant 0 : index
    %3 = vector.load %arg3[%c0_3, %c0_4] : memref<1x128xf32, #tpu.memory_space<vmem>>, vector<1x128xf32>
    %4 = vector.broadcast %3 : vector<1x128xf32> to vector<16x128xf32>
    %5 = arith.addf %1, %4 : vector<16x128xf32>
    %6 = vector.broadcast %2 : vector<1x128xf32> to vector<16x128xf32>
    %7 = arith.mulf %6, %5 : vector<16x128xf32>
    %c0_5 = arith.constant 0 : index
    %c0_6 = arith.constant 0 : index
    %8 = vector.load %arg4[%c0_5, %c0_6] : memref<16x128xf32, #tpu.memory_space<vmem>>, vector<16x128xf32>
    tpu.vector_store %arg4[%c0_5, %c0_6], %7 {strides = array<i32>} : memref<16x128xf32, #tpu.memory_space<vmem>>, vector<16x128xf32>,
    return
  }
  func.func @transform_0(%arg0: i32) -> (i32, i32) {
    %c0_i32 = arith.constant 0 : i32
    %c0_i32_0 = arith.constant 0 : i32
    return %arg0, %c0_i32 : i32, i32
  }
  func.func @transform_1(%arg0: i32) -> (i32, i32) {
    %c0_i32 = arith.constant 0 : i32
    %c0_i32_0 = arith.constant 0 : i32
    %c0_i32_1 = arith.constant 0 : i32
    return %c0_i32, %c0_i32_0 : i32, i32
  }
  func.func @transform_2(%arg0: i32) -> (i32, i32) {
    %c0_i32 = arith.constant 0 : i32
    %c0_i32_0 = arith.constant 0 : i32
    %c0_i32_1 = arith.constant 0 : i32
    return %c0_i32, %c0_i32_0 : i32, i32
  }
  func.func @transform_3(%arg0: i32) -> (i32, i32) {
    %c0_i32 = arith.constant 0 : i32
    %c0_i32_0 = arith.constant 0 : i32
    return %arg0, %c0_i32 : i32, i32
  }
}

</mosaic_0001>

<bundles_post_ra>
// kernel: tpu_custom_call.1
= control target key start
LH: loop header
LB: loop body
LE: loop exit
PB: predicated region body
PF: predicated region fallthrough
CT: control target
= control target key end

     0   :  { %8 = vsyncpa [#allocation3], 0  ;;  %s217_s0 = inlined_call_operand.hbm [shape: f32[16,32], index: 0, kind: input, shape index: {}]   ;;  %s218_s1 = inlined_call_operand.vmem [shape: f32[1,128], index: 1, kind: input, shape index: {}]   ;;  %s219_s2 = inlined_call_operand.vmem [shape: f32[1,128], index: 2, kind: input, shape index: {}]   ;;  %s220_s3 = inlined_call_operand.hbm [shape: f32[16,128], index: 3, kind: output, shape index: {}]  }
   0x1   :  { %9 = vsyncpa [#allocation4], 0  ;;  %s154_s12 = smov [#allocation2]   ;;  %s106_s16 = scalar_lea.hbm %s217_s0, 256 }
   0x2   :  { %s15_s13 = sshll.u32 %s154_s12, 4  ;;  %p107_p0 = scmp.ne.s32.totalorder %s217_s0, %s106_s16  ;;  %s16_s13 = int_to_ptr.vmem [resolvable:$true] %s15_s13 }
   0x3   :  { %p110_p1 = scmp.lt.u32.totalorder %s106_s16, %s217_s0 }
   0x5   :  { %p112_p2 = pnand %p110_p1, %p107_p0 }
   0x7   :  { %115 = shalt.err (!%p112_p2)
}
   0x8   :  { %s116_s21 = scalar_lea.vmem %s16_s13, 256  ;;  %p121_p4 = scmp.lt.s32.totalorder %s16_s13, %s16_s13 }
   0x9   :  { %p117_p3 = scmp.ne.s32.totalorder %s16_s13, %s116_s21  ;;  %p122_p5 = scmp.lt.s32.totalorder %s116_s21, %s116_s21 }
   0xb   :  { %p123_p6 = por %p122_p5, %p121_p4 }
   0xd   :  { %p124_p7 = pnand %p123_p6, %p117_p3 }
   0xf   :  { %127 = shalt.err (!%p124_p7)
}
  0x10   :  { %s155_s22 = smov 128   ;;  %s156_s23 = smov 8  }
  0x11   :  { %21 = dma.hbm_to_vmem [thread:$0]  %s217_s0, 256, %s16_s13, [#allocation3], %s155_s22, %s155_s22, %s156_s23  }
  0x12   :  { %150 = dma.done.wait [#allocation3], 256  }
  0x13   :  { %151 = vsyncadd [#allocation3], 4294967040  ;;  %v29_v0 = vld [vmem:[#allocation2] sm:$0xff]  ;;  %s157_s26 = smov 64   ;;  %s158_s27 = smov 32   ;;  %v30_v1 = vld [vmem:[#allocation2 + $0x8] sm:$0xff] }
  0x14   :  { %39 = vrot.lane.b32.xlu1 %v29_v0, %s157_s26  ;;  %33 = vrot.lane.b32.xlu0 %v29_v0, %s158_s27  ;;  %s159_s28 = smov 96   ;;  %vm51_vm0 = vcmask 261120   ;;  %vm54_vm1 = vcmask 523264   ;;  %vm57_vm2 = vcmask 785408   ;;  %v97_v8 = vld [vmem:[%s219_s2] ss:$0 sm:$0xff] }
  0x15   :  { %v98_v13 = vld [vmem:[%s218_s1] ss:$0 sm:$0xff]  ;;  %s160_s5 = smov [#allocation5]  }
  0x16   :  { %s85_s6 = sshll.u32 %s160_s5, 4  ;;  %s86_s6 = int_to_ptr.vmem [resolvable:$true] %s85_s6 }
  0x17   :  { %s128_s2 = scalar_lea.vmem %s86_s6, 256  ;;  %p133_p9 = scmp.lt.s32.totalorder %s86_s6, %s86_s6 }
  0x18   :  { %41 = vrot.lane.b32.xlu1 %v30_v1, %s157_s26  ;;  %35 = vrot.lane.b32.xlu0 %v30_v1, %s158_s27  ;;  %p129_p8 = scmp.ne.s32.totalorder %s86_s6, %s128_s2  ;;  %p134_p10 = scmp.lt.s32.totalorder %s128_s2, %s128_s2 }
  0x1a   :  { %p135_p11 = por %p134_p10, %p133_p9 }
  0x1c   :  { %47 = vrot.lane.b32.xlu1 %v30_v1, %s159_s28  ;;  %45 = vrot.lane.b32.xlu0 %v29_v0, %s159_s28  ;;  %p136_p12 = pnand %p135_p11, %p129_p8 }
  0x86   :  { %v40_v2 = vpop.permute.xlu1 %39  ;;  %v34_v3 = vpop.permute.xlu0 %33 }
  0x87   :  { %v52_v6 = vsel %vm51_vm0, %v29_v0, %v34_v3 }
  0x88   :  { %v55_v11 = vsel %vm54_vm1, %v52_v6, %v40_v2 }
  0x8a   :  { %v42_v4 = vpop.permute.xlu1 %41  ;;  %v36_v5 = vpop.permute.xlu0 %35 }
  0x8b   :  { %v53_v7 = vsel %vm51_vm0, %v30_v1, %v36_v5 }
  0x8c   :  { %v56_v10 = vsel %vm54_vm1, %v53_v7, %v42_v4 }
  0x8e   :  { %v48_v9 = vpop.permute.xlu1 %47  ;;  %v46_v12 = vpop.permute.xlu0 %45 }
  0x8f   :  { %v59_v14 = vsel %vm57_vm2, %v56_v10, %v48_v9  ;;  %v58_v15 = vsel %vm57_vm2, %v55_v11, %v46_v12 }
  0x90   :  { %v69_v16 = vadd.f32 %v97_v8, %v59_v14  ;;  %v68_v17 = vadd.f32 %v97_v8, %v58_v15 }
  0x92   :  { %v77_v18 = vmul.f32 %v98_v13, %v69_v16  ;;  %v76_v19 = vmul.f32 %v98_v13, %v68_v17 }
  0x94   :  { %79 = vst [vmem:[#allocation5 + $0x8] sm:$0xff] %v77_v18  ;;  %78 = vst [vmem:[#allocation5] sm:$0xff] %v76_v19 }
  0x95   :  { %139 = shalt.err (!%p136_p12)
}
  0x96   :  { %s140_s8 = scalar_lea.hbm %s220_s3, 256 }
  0x97   :  { %p141_p13 = scmp.ne.s32.totalorder %s220_s3, %s140_s8  ;;  %p144_p0 = scmp.lt.u32.totalorder %s140_s8, %s220_s3 }
  0x99   :  { %p146_p1 = pnand %p144_p0, %p141_p13 }
  0x9b   :  { %149 = shalt.err (!%p146_p1)
}
  0x9c   :  { %91 = dma.vmem_to_hbm [thread:$0]  %s86_s6, 256, %s220_s3, [#allocation4], %s155_s22, %s155_s22, %s156_s23  }
  0x9d   :  { %152 = dma.done.wait [#allocation4], 256  }
  0x9e   :  { %153 = vsyncadd [#allocation4], 4294967040 }
  0x9f   :  { %95 = vsyncpa [#allocation3], 1 }
  0xa0   :  { %96 = vsyncpa [#allocation4], 1 }

</bundles_post_ra>
